<compile_context>
chip_gen: v7x
topology: tpu7x:2x2x1
jax: 0.10.0
libtpu: 0.0.40
codegen_flags: <defaults>
</compile_context>

<pallas_src>
import jax
import jax.numpy as jnp
from jax.experimental import pallas as pl
from jax.experimental.pallas import tpu as pltpu


def _round_up(x, m):
    return ((x + m - 1) // m) * m


def _cdiv(a, b):
    return -(-a // b)


def _vmem_capacity_bytes():
    try:
        info = pltpu.get_tpu_info()
        cap = int(getattr(info, "vmem_capacity_bytes", 0))
        if cap > 0:
            return cap
    except Exception:
        pass
    return 64 * 1024 * 1024  # conservative default (v7x per-TC VMEM)


def _make_kernel(TH, Wo, Cin, Cp, kh, kw):
    def kernel(x_ref, w_ref, p_ref, o_ref):
        # x_ref: (Hp_pad, Wp, Cin) bf16  -- one spatially padded NHWC image
        # w_ref: (kh*kw, Cin, Cp)  bf16  -- per-tap weight matrices (Cout padded)
        # p_ref: (3, Cp) f32             -- rows: conv bias, BN scale, BN shift
        # o_ref: (TH, Wo, Cp)            -- lane-dense output row-block
        hb = pl.program_id(1)
        h0 = pl.multiple_of(hb * TH, TH)
        acc = jnp.zeros((TH * Wo, Cp), jnp.float32)
        for ky in range(kh):
            xk = x_ref[pl.ds(h0 + ky, TH)]                 # (TH, Wp, Cin)
            for kx in range(kw):
                xs = xk[:, kx:kx + Wo, :].reshape(TH * Wo, Cin)
                acc = acc + jnp.dot(xs, w_ref[ky * kw + kx],
                                    preferred_element_type=jnp.float32)
        out = acc + p_ref[0:1, :]                          # conv bias (f32)
        # drop1: nn.Dropout -> identity in inference mode.
        # TODO(synk): training-mode dropout RNG (pltpu.prng_*) not reproduced.
        out = jnp.maximum(out, 0.0)                        # ReLU
        out = out * p_ref[1:2, :] + p_ref[2:3, :]          # BatchNorm2d (eval)
        o_ref[...] = out.reshape(TH, Wo, Cp).astype(o_ref.dtype)
    return kernel


def basic_block_forward(x, w, b, gamma, beta, running_mean, running_var,
                        *, eps=1e-5, stride=1, padding=1, dilation=1,
                        compute_dtype=jnp.bfloat16, out_dtype=jnp.float32,
                        data_format="NCHW", small_channel_fallback=False):
    """x: (N,Cin,H,W) NCHW (or NHWC); w: (Cout,Cin,kh,kw) PyTorch OIHW."""
    assert stride == 1, "TODO(synk): only stride=1 (module default) is implemented"
    assert dilation == 1, "only dilation=1 is implemented"

    if data_format == "NCHW":
        N, Cin, H, W = x.shape
        x_nhwc = jnp.transpose(x, (0, 2, 3, 1))
    elif data_format == "NHWC":
        N, H, W, Cin = x.shape
        x_nhwc = x
    else:
        raise ValueError(f"bad data_format {data_format!r}")

    Cout, Cin_w, kh, kw = w.shape
    assert Cin_w == Cin, "grouped conv (groups != 1) not supported"

    Ho = H + 2 * padding - kh + 1
    Wo = W + 2 * padding - kw + 1
    assert Ho > 0 and Wo > 0

    # Folded BatchNorm(eval) affine parameters, f32.
    scale = (gamma / jnp.sqrt(running_var + eps)).astype(jnp.float32)
    shift = (beta - running_mean * scale).astype(jnp.float32)

    if small_channel_fallback and Cout < 64 and kh * kw * Cin < 64:
        # Tiny-channel shapes: 128-lane padding inflates bytes/FLOPs; let XLA
        # handle them.  (Disabled by default so the Pallas path is exercised.)
        out = jax.lax.conv_general_dilated(
            x_nhwc.astype(jnp.float32),
            jnp.transpose(w, (2, 3, 1, 0)).astype(jnp.float32),
            window_strides=(1, 1), padding=[(padding, padding)] * 2,
            dimension_numbers=("NHWC", "HWIO", "NHWC"),
            preferred_element_type=jnp.float32)
        out = jnp.maximum(out + b[None, None, None, :], 0.0)
        out = (out * scale[None, None, None, :]
               + shift[None, None, None, :]).astype(out_dtype)
        return out if data_format == "NHWC" else jnp.transpose(out, (0, 3, 1, 2))

    Cp = _round_up(Cout, 128)                 # lane-dense output channels
    Wp = W + 2 * padding
    in_item = jnp.dtype(compute_dtype).itemsize
    out_item = jnp.dtype(out_dtype).itemsize

    # ---- H-block size: target >= 8 grid steps total, capped by VMEM budget --
    vmem_cap = _vmem_capacity_bytes()
    vmem_budget = vmem_cap // 2
    # Fixed per-step VMEM: double-buffered padded image + weight tile + params.
    fixed = (2 * (Ho + kh - 1 + 8) * Wp * Cin * in_item
             + 2 * kh * kw * Cin * Cp * in_item
             + 2 * 8 * Cp * 4)
    # Per-output-row VMEM: f32 acc + bf16 tap temps + double-buffered out block.
    var_per_row = (Wo * (Cp * 4 + Cin * in_item + 2 * Cp * out_item)
                   + Wp * Cin * in_item)
    if fixed + var_per_row > vmem_budget:
        raise ValueError("BasicBlock Pallas kernel: layer too large for VMEM; "
                         "route this shape to the XLA conv path instead.")
    th_cap = max(1, (vmem_budget - fixed) // var_per_row)
    desired_hblk = max(1, _cdiv(8, N))        # >= 8 total steps (>= 4 / v7x core)
    TH = max(1, min(Ho, _cdiv(Ho, desired_hblk), th_cap))
    n_hblk = _cdiv(Ho, TH)
    Ho_pad = n_hblk * TH                      # extra rows computed then sliced off

    # ---- pad / pack inputs ---------------------------------------------------
    Hp_pad = Ho_pad + kh - 1
    xp = jnp.pad(x_nhwc.astype(compute_dtype),
                 ((0, 0),
                  (padding, padding + (Ho_pad - Ho)),
                  (padding, padding),
                  (0, 0)))                    # (N, Hp_pad, Wp, Cin)

    w_taps = jnp.transpose(w, (2, 3, 1, 0)).reshape(kh * kw, Cin, Cout)
    w_full = jnp.zeros((kh * kw, Cin, Cp), compute_dtype)
    w_full = w_full.at[:, :, :Cout].set(w_taps.astype(compute_dtype))

    params = jnp.zeros((3, Cp), jnp.float32)
    params = params.at[0, :Cout].set(b.astype(jnp.float32))   # conv bias
    params = params.at[1, :Cout].set(scale)                   # BN scale
    params = params.at[2, :Cout].set(shift)                   # BN shift

    kernel = _make_kernel(TH, Wo, Cin, Cp, kh, kw)
    vmem_limit = int(min(max(32 * 1024 * 1024,
                             fixed + var_per_row * TH + (8 << 20)),
                         vmem_cap * 3 // 4))

    out4d = pl.pallas_call(
        kernel,
        out_shape=jax.ShapeDtypeStruct((N, Ho_pad, Wo, Cp), out_dtype),
        grid=(N, n_hblk),
        in_specs=[
            # Full padded image per batch index (fetched once per n: the block
            # index is constant along the hb axis).
            pl.BlockSpec((None, Hp_pad, Wp, Cin), lambda n, hb: (n, 0, 0, 0)),
            # TODO(synk): pipeline_mode=pl.Buffered(1) on the two grid-invariant
            # inputs below would halve their VMEM footprint (kept default for
            # lowering safety).
            pl.BlockSpec((kh * kw, Cin, Cp), lambda n, hb: (0, 0, 0)),
            pl.BlockSpec((3, Cp), lambda n, hb: (0, 0)),
        ],
        out_specs=pl.BlockSpec((None, TH, Wo, Cp), lambda n, hb: (n, hb, 0, 0)),
        compiler_params=pltpu.CompilerParams(
            dimension_semantics=("parallel", "parallel"),
            vmem_limit_bytes=vmem_limit),
    )(xp, w_full, params)

    # Drop the padded output rows / channels right at the pallas_call boundary.
    out = out4d[:, :Ho, :, :Cout]
    return out if data_format == "NHWC" else jnp.transpose(out, (0, 3, 1, 2))


def _reference(x, w, b, gamma, beta, running_mean, running_var, eps=1e-5,
               padding=1, compute_dtype=jnp.float32):
    out = jax.lax.conv_general_dilated(
        x.astype(compute_dtype), w.astype(compute_dtype),
        window_strides=(1, 1),
        padding=[(padding, padding), (padding, padding)],
        dimension_numbers=("NCHW", "OIHW", "NCHW"),
        preferred_element_type=jnp.float32)
    out = out + b[None, :, None, None]
    out = jnp.maximum(out, 0.0)
    scale = gamma / jnp.sqrt(running_var + eps)
    shift = beta - running_mean * scale
    return out * scale[None, :, None, None] + shift[None, :, None, None]


if __name__ == "__main__":
    N, inplanes, planes, H, W = 2, 4, 8, 16, 16

    key = jax.random.PRNGKey(0)
    kx, kw_, kb, kg, kbe, krm, krv = jax.random.split(key, 7)

    x = jax.random.normal(kx, (N, inplanes, H, W), jnp.float32)
    w = 0.1 * jax.random.normal(kw_, (planes, inplanes, 3, 3), jnp.float32)
    b = 0.1 * jax.random.normal(kb, (planes,), jnp.float32)
    gamma = 1.0 + 0.1 * jax.random.normal(kg, (planes,), jnp.float32)
    beta = 0.1 * jax.random.normal(kbe, (planes,), jnp.float32)
    running_mean = 0.1 * jax.random.normal(krm, (planes,), jnp.float32)
    running_var = 0.5 + jnp.abs(jax.random.normal(krv, (planes,), jnp.float32))

    out = basic_block_forward(x, w, b, gamma, beta, running_mean, running_var)
    out = jax.block_until_ready(out)
    assert out.shape == (N, planes, H, W)

    # Kernel uses bf16 MXU inputs with f32 accumulation + f32 epilogue:
    # compare tightly against a bf16-input reference, loosely against full f32.
    ref_bf16 = _reference(x, w, b, gamma, beta, running_mean, running_var,
                          compute_dtype=jnp.bfloat16)
    ref_f32 = _reference(x, w, b, gamma, beta, running_mean, running_var,
                         compute_dtype=jnp.float32)
    err_bf16 = float(jnp.max(jnp.abs(out - ref_bf16)))
    err_f32 = float(jnp.max(jnp.abs(out - ref_f32)))
    assert jnp.allclose(out, ref_bf16, rtol=2e-2, atol=2e-2), err_bf16
    assert jnp.allclose(out, ref_f32, rtol=1e-1, atol=1e-1), err_f32

    print("KERNEL_OK")
</pallas_src>

<mosaic_0001>
module attributes {stable_mosaic.version = 11 : i64} {
  func.func @kernel(%arg0: i32, %arg1: i32, %arg2: memref<1x18x18x4xbf16, #tpu.memory_space<vmem>>, %arg3: memref<9x4x128xbf16, #tpu.memory_space<vmem>>, %arg4: memref<3x128xf32, #tpu.memory_space<vmem>>, %arg5: memref<1x4x16x128xf32, #tpu.memory_space<vmem>>) attributes {dimension_semantics = [#tpu.dimension_semantics<parallel>, #tpu.dimension_semantics<parallel>], iteration_bounds = array<i64: 2, 4>, scalar_prefetch = 0 : i64, scratch_operands = 0 : i64, tpu.core_type = #tpu.core_type<tc>, window_params = [{transform_indices = @transform_0, window_bounds = array<i64: 1, 18, 18, 4>}, {pipeline_mode = #tpu.pipeline_mode<synchronous>, transform_indices = @transform_1, window_bounds = array<i64: 9, 4, 128>}, {pipeline_mode = #tpu.pipeline_mode<synchronous>, transform_indices = @transform_2, window_bounds = array<i64: 3, 128>}, {transform_indices = @transform_3, window_bounds = array<i64: 1, 4, 16, 128>}]} {
    %c4_i32 = arith.constant 4 : i32
    %0 = arith.muli %arg1, %c4_i32 : i32
    %1 = tpu.assume_multiple %0, 4 : i32
    %cst = arith.constant 0.000000e+00 : f32
    %2 = vector.broadcast %cst : f32 to vector<64x128xf32>
    %c0_i32 = arith.constant 0 : i32
    %3 = arith.addi %1, %c0_i32 : i32
    %c0 = arith.constant 0 : index
    %4 = arith.index_cast %3 : i32 to index
    %c0_0 = arith.constant 0 : index
    %c0_1 = arith.constant 0 : index
    %5 = vector.load %arg2[%c0, %4, %c0_0, %c0_1] : memref<1x18x18x4xbf16, #tpu.memory_space<vmem>>, vector<1x4x18x4xbf16>
    %6 = vector.shape_cast %5 : vector<1x4x18x4xbf16> to vector<4x18x4xbf16>
    %7 = vector.extract_strided_slice %6 {offsets = [0, 0, 0], sizes = [4, 16, 4], strides = [1, 1, 1]} : vector<4x18x4xbf16> to vector<4x16x4xbf16>
    %8 = vector.shape_cast %7 : vector<4x16x4xbf16> to vector<64x4xbf16>
    %c0_2 = arith.constant 0 : index
    %c0_3 = arith.constant 0 : index
    %c0_4 = arith.constant 0 : index
    %9 = vector.load %arg3[%c0_2, %c0_3, %c0_4] : memref<9x4x128xbf16, #tpu.memory_space<vmem>>, vector<1x4x128xbf16>
    %10 = vector.shape_cast %9 : vector<1x4x128xbf16> to vector<4x128xbf16>
    %cst_5 = arith.constant dense<0.000000e+00> : vector<64x128xf32>
    %11 = tpu.matmul %8, %10, %cst_5 {dimension_numbers = #tpu.dot_dimension_numbers<[1], [0], [0], [1], [0, 0, 1, 1], [], []>} : vector<64x4xbf16>, vector<4x128xbf16>, vector<64x128xf32> -> vector<64x128xf32>
    %12 = arith.addf %2, %11 : vector<64x128xf32>
    %13 = vector.extract_strided_slice %6 {offsets = [0, 1, 0], sizes = [4, 16, 4], strides = [1, 1, 1]} : vector<4x18x4xbf16> to vector<4x16x4xbf16>
    %14 = vector.shape_cast %13 : vector<4x16x4xbf16> to vector<64x4xbf16>
    %c1 = arith.constant 1 : index
    %c0_6 = arith.constant 0 : index
    %c0_7 = arith.constant 0 : index
    %15 = vector.load %arg3[%c1, %c0_6, %c0_7] : memref<9x4x128xbf16, #tpu.memory_space<vmem>>, vector<1x4x128xbf16>
    %16 = vector.shape_cast %15 : vector<1x4x128xbf16> to vector<4x128xbf16>
    %cst_8 = arith.constant dense<0.000000e+00> : vector<64x128xf32>
    %17 = tpu.matmul %14, %16, %cst_8 {dimension_numbers = #tpu.dot_dimension_numbers<[1], [0], [0], [1], [0, 0, 1, 1], [], []>} : vector<64x4xbf16>, vector<4x128xbf16>, vector<64x128xf32> -> vector<64x128xf32>
    %18 = arith.addf %12, %17 : vector<64x128xf32>
    %19 = vector.extract_strided_slice %6 {offsets = [0, 2, 0], sizes = [4, 16, 4], strides = [1, 1, 1]} : vector<4x18x4xbf16> to vector<4x16x4xbf16>
    %20 = vector.shape_cast %19 : vector<4x16x4xbf16> to vector<64x4xbf16>
    %c2 = arith.constant 2 : index
    %c0_9 = arith.constant 0 : index
    %c0_10 = arith.constant 0 : index
    %21 = vector.load %arg3[%c2, %c0_9, %c0_10] : memref<9x4x128xbf16, #tpu.memory_space<vmem>>, vector<1x4x128xbf16>
    %22 = vector.shape_cast %21 : vector<1x4x128xbf16> to vector<4x128xbf16>
    %cst_11 = arith.constant dense<0.000000e+00> : vector<64x128xf32>
    %23 = tpu.matmul %20, %22, %cst_11 {dimension_numbers = #tpu.dot_dimension_numbers<[1], [0], [0], [1], [0, 0, 1, 1], [], []>} : vector<64x4xbf16>, vector<4x128xbf16>, vector<64x128xf32> -> vector<64x128xf32>
    %24 = arith.addf %18, %23 : vector<64x128xf32>
    %c1_i32 = arith.constant 1 : i32
    %25 = arith.addi %1, %c1_i32 : i32
    %c0_12 = arith.constant 0 : index
    %26 = arith.index_cast %25 : i32 to index
    %c0_13 = arith.constant 0 : index
    %c0_14 = arith.constant 0 : index
    %27 = vector.load %arg2[%c0_12, %26, %c0_13, %c0_14] : memref<1x18x18x4xbf16, #tpu.memory_space<vmem>>, vector<1x4x18x4xbf16>
    %28 = vector.shape_cast %27 : vector<1x4x18x4xbf16> to vector<4x18x4xbf16>
    %29 = vector.extract_strided_slice %28 {offsets = [0, 0, 0], sizes = [4, 16, 4], strides = [1, 1, 1]} : vector<4x18x4xbf16> to vector<4x16x4xbf16>
    %30 = vector.shape_cast %29 : vector<4x16x4xbf16> to vector<64x4xbf16>
    %c3 = arith.constant 3 : index
    %c0_15 = arith.constant 0 : index
    %c0_16 = arith.constant 0 : index
    %31 = vector.load %arg3[%c3, %c0_15, %c0_16] : memref<9x4x128xbf16, #tpu.memory_space<vmem>>, vector<1x4x128xbf16>
    %32 = vector.shape_cast %31 : vector<1x4x128xbf16> to vector<4x128xbf16>
    %cst_17 = arith.constant dense<0.000000e+00> : vector<64x128xf32>
    %33 = tpu.matmul %30, %32, %cst_17 {dimension_numbers = #tpu.dot_dimension_numbers<[1], [0], [0], [1], [0, 0, 1, 1], [], []>} : vector<64x4xbf16>, vector<4x128xbf16>, vector<64x128xf32> -> vector<64x128xf32>
    %34 = arith.addf %24, %33 : vector<64x128xf32>
    %35 = vector.extract_strided_slice %28 {offsets = [0, 1, 0], sizes = [4, 16, 4], strides = [1, 1, 1]} : vector<4x18x4xbf16> to vector<4x16x4xbf16>
    %36 = vector.shape_cast %35 : vector<4x16x4xbf16> to vector<64x4xbf16>
    %c4 = arith.constant 4 : index
    %c0_18 = arith.constant 0 : index
    %c0_19 = arith.constant 0 : index
    %37 = vector.load %arg3[%c4, %c0_18, %c0_19] : memref<9x4x128xbf16, #tpu.memory_space<vmem>>, vector<1x4x128xbf16>
    %38 = vector.shape_cast %37 : vector<1x4x128xbf16> to vector<4x128xbf16>
    %cst_20 = arith.constant dense<0.000000e+00> : vector<64x128xf32>
    %39 = tpu.matmul %36, %38, %cst_20 {dimension_numbers = #tpu.dot_dimension_numbers<[1], [0], [0], [1], [0, 0, 1, 1], [], []>} : vector<64x4xbf16>, vector<4x128xbf16>, vector<64x128xf32> -> vector<64x128xf32>
    %40 = arith.addf %34, %39 : vector<64x128xf32>
    %41 = vector.extract_strided_slice %28 {offsets = [0, 2, 0], sizes = [4, 16, 4], strides = [1, 1, 1]} : vector<4x18x4xbf16> to vector<4x16x4xbf16>
    %42 = vector.shape_cast %41 : vector<4x16x4xbf16> to vector<64x4xbf16>
    %c5 = arith.constant 5 : index
    %c0_21 = arith.constant 0 : index
    %c0_22 = arith.constant 0 : index
    %43 = vector.load %arg3[%c5, %c0_21, %c0_22] : memref<9x4x128xbf16, #tpu.memory_space<vmem>>, vector<1x4x128xbf16>
    %44 = vector.shape_cast %43 : vector<1x4x128xbf16> to vector<4x128xbf16>
    %cst_23 = arith.constant dense<0.000000e+00> : vector<64x128xf32>
    %45 = tpu.matmul %42, %44, %cst_23 {dimension_numbers = #tpu.dot_dimension_numbers<[1], [0], [0], [1], [0, 0, 1, 1], [], []>} : vector<64x4xbf16>, vector<4x128xbf16>, vector<64x128xf32> -> vector<64x128xf32>
    %46 = arith.addf %40, %45 : vector<64x128xf32>
    %c2_i32 = arith.constant 2 : i32
    %47 = arith.addi %1, %c2_i32 : i32
    %c0_24 = arith.constant 0 : index
    %48 = arith.index_cast %47 : i32 to index
    %c0_25 = arith.constant 0 : index
    %c0_26 = arith.constant 0 : index
    %49 = vector.load %arg2[%c0_24, %48, %c0_25, %c0_26] : memref<1x18x18x4xbf16, #tpu.memory_space<vmem>>, vector<1x4x18x4xbf16>
    %50 = vector.shape_cast %49 : vector<1x4x18x4xbf16> to vector<4x18x4xbf16>
    %51 = vector.extract_strided_slice %50 {offsets = [0, 0, 0], sizes = [4, 16, 4], strides = [1, 1, 1]} : vector<4x18x4xbf16> to vector<4x16x4xbf16>
    %52 = vector.shape_cast %51 : vector<4x16x4xbf16> to vector<64x4xbf16>
    %c6 = arith.constant 6 : index
    %c0_27 = arith.constant 0 : index
    %c0_28 = arith.constant 0 : index
    %53 = vector.load %arg3[%c6, %c0_27, %c0_28] : memref<9x4x128xbf16, #tpu.memory_space<vmem>>, vector<1x4x128xbf16>
    %54 = vector.shape_cast %53 : vector<1x4x128xbf16> to vector<4x128xbf16>
    %cst_29 = arith.constant dense<0.000000e+00> : vector<64x128xf32>
    %55 = tpu.matmul %52, %54, %cst_29 {dimension_numbers = #tpu.dot_dimension_numbers<[1], [0], [0], [1], [0, 0, 1, 1], [], []>} : vector<64x4xbf16>, vector<4x128xbf16>, vector<64x128xf32> -> vector<64x128xf32>
    %56 = arith.addf %46, %55 : vector<64x128xf32>
    %57 = vector.extract_strided_slice %50 {offsets = [0, 1, 0], sizes = [4, 16, 4], strides = [1, 1, 1]} : vector<4x18x4xbf16> to vector<4x16x4xbf16>
    %58 = vector.shape_cast %57 : vector<4x16x4xbf16> to vector<64x4xbf16>
    %c7 = arith.constant 7 : index
    %c0_30 = arith.constant 0 : index
    %c0_31 = arith.constant 0 : index
    %59 = vector.load %arg3[%c7, %c0_30, %c0_31] : memref<9x4x128xbf16, #tpu.memory_space<vmem>>, vector<1x4x128xbf16>
    %60 = vector.shape_cast %59 : vector<1x4x128xbf16> to vector<4x128xbf16>
    %cst_32 = arith.constant dense<0.000000e+00> : vector<64x128xf32>
    %61 = tpu.matmul %58, %60, %cst_32 {dimension_numbers = #tpu.dot_dimension_numbers<[1], [0], [0], [1], [0, 0, 1, 1], [], []>} : vector<64x4xbf16>, vector<4x128xbf16>, vector<64x128xf32> -> vector<64x128xf32>
    %62 = arith.addf %56, %61 : vector<64x128xf32>
    %63 = vector.extract_strided_slice %50 {offsets = [0, 2, 0], sizes = [4, 16, 4], strides = [1, 1, 1]} : vector<4x18x4xbf16> to vector<4x16x4xbf16>
    %64 = vector.shape_cast %63 : vector<4x16x4xbf16> to vector<64x4xbf16>
    %c8 = arith.constant 8 : index
    %c0_33 = arith.constant 0 : index
    %c0_34 = arith.constant 0 : index
    %65 = vector.load %arg3[%c8, %c0_33, %c0_34] : memref<9x4x128xbf16, #tpu.memory_space<vmem>>, vector<1x4x128xbf16>
    %66 = vector.shape_cast %65 : vector<1x4x128xbf16> to vector<4x128xbf16>
    %cst_35 = arith.constant dense<0.000000e+00> : vector<64x128xf32>
    %67 = tpu.matmul %64, %66, %cst_35 {dimension_numbers = #tpu.dot_dimension_numbers<[1], [0], [0], [1], [0, 0, 1, 1], [], []>} : vector<64x4xbf16>, vector<4x128xbf16>, vector<64x128xf32> -> vector<64x128xf32>
    %68 = arith.addf %62, %67 : vector<64x128xf32>
    %c0_36 = arith.constant 0 : index
    %c0_37 = arith.constant 0 : index
    %69 = vector.load %arg4[%c0_36, %c0_37] : memref<3x128xf32, #tpu.memory_space<vmem>>, vector<1x128xf32>
    %70 = vector.broadcast %69 : vector<1x128xf32> to vector<64x128xf32>
    %71 = arith.addf %68, %70 : vector<64x128xf32>
    %cst_38 = arith.constant 0.000000e+00 : f32
    %72 = vector.broadcast %cst_38 : f32 to vector<64x128xf32>
    %73 = arith.maximumf %71, %72 : vector<64x128xf32>
    %c1_39 = arith.constant 1 : index
    %c0_40 = arith.constant 0 : index
    %74 = vector.load %arg4[%c1_39, %c0_40] : memref<3x128xf32, #tpu.memory_space<vmem>>, vector<1x128xf32>
    %75 = vector.broadcast %74 : vector<1x128xf32> to vector<64x128xf32>
    %76 = arith.mulf %73, %75 : vector<64x128xf32>
    %c2_41 = arith.constant 2 : index
    %c0_42 = arith.constant 0 : index
    %77 = vector.load %arg4[%c2_41, %c0_42] : memref<3x128xf32, #tpu.memory_space<vmem>>, vector<1x128xf32>
    %78 = vector.broadcast %77 : vector<1x128xf32> to vector<64x128xf32>
    %79 = arith.addf %76, %78 : vector<64x128xf32>
    %80 = vector.shape_cast %79 : vector<64x128xf32> to vector<4x16x128xf32>
    %c0_43 = arith.constant 0 : index
    %c0_44 = arith.constant 0 : index
    %c0_45 = arith.constant 0 : index
    %c0_46 = arith.constant 0 : index
    %81 = vector.load %arg5[%c0_43, %c0_44, %c0_45, %c0_46] : memref<1x4x16x128xf32, #tpu.memory_space<vmem>>, vector<1x4x16x128xf32>
    %82 = vector.shape_cast %81 : vector<1x4x16x128xf32> to vector<4x16x128xf32>
    %83 = vector.shape_cast %80 : vector<4x16x128xf32> to vector<1x4x16x128xf32>
    tpu.vector_store %arg5[%c0_43, %c0_44, %c0_45, %c0_46], %83 {strides = array<i32>} : memref<1x4x16x128xf32, #tpu.memory_space<vmem>>, vector<1x4x16x128xf32>,
    return
  }
  func.func @transform_0(%arg0: i32, %arg1: i32) -> (i32, i32, i32, i32) {
    %c0_i32 = arith.constant 0 : i32
    %c0_i32_0 = arith.constant 0 : i32
    %c0_i32_1 = arith.constant 0 : i32
    %c0_i32_2 = arith.constant 0 : i32
    return %arg0, %c0_i32, %c0_i32_0, %c0_i32_1 : i32, i32, i32, i32
  }
  func.func @transform_1(%arg0: i32, %arg1: i32) -> (i32, i32, i32) {
    %c0_i32 = arith.constant 0 : i32
    %c0_i32_0 = arith.constant 0 : i32
    %c0_i32_1 = arith.constant 0 : i32
    %c0_i32_2 = arith.constant 0 : i32
    return %c0_i32, %c0_i32_0, %c0_i32_1 : i32, i32, i32
  }
  func.func @transform_2(%arg0: i32, %arg1: i32) -> (i32, i32) {
    %c0_i32 = arith.constant 0 : i32
    %c0_i32_0 = arith.constant 0 : i32
    %c0_i32_1 = arith.constant 0 : i32
    return %c0_i32, %c0_i32_0 : i32, i32
  }
  func.func @transform_3(%arg0: i32, %arg1: i32) -> (i32, i32, i32, i32) {
    %c0_i32 = arith.constant 0 : i32
    %c0_i32_0 = arith.constant 0 : i32
    %c0_i32_1 = arith.constant 0 : i32
    return %arg0, %arg1, %c0_i32, %c0_i32_0 : i32, i32, i32, i32
  }
}

</mosaic_0001>

<bundles_post_ra>
// kernel: tpu_custom_call.1
= control target key start
LH: loop header
LB: loop body
LE: loop exit
PB: predicated region body
PF: predicated region fallthrough
CT: control target
= control target key end

     0   :  { %8 = vsyncpa [#allocation3], 0  ;;  %s2895_s0 = inlined_call_operand.vmem [shape: bf16[2,18,18,4], index: 0, kind: input, shape index: {}]   ;;  %s2896_s1 = inlined_call_operand.vmem [shape: bf16[9,4,128], index: 1, kind: input, shape index: {}]   ;;  %s2897_s2 = inlined_call_operand.vmem [shape: f32[3,128], index: 2, kind: input, shape index: {}]   ;;  %s2898_s3 = inlined_call_operand.hbm [shape: f32[2,16,16,128], index: 3, kind: output, shape index: {}]  }
   0x1   :  { %10 = vsyncpa [#allocation3 + $0x1], 0  ;;  %s2266_s12 = smov 0   ;;  %s2268_s13 = smov 0  }
   0x2   :  { %s2270_s14 = smov 0   ;;  %s2272_s15 = smov 0  }
   0x3   :  { %s2274_s16 = smov 0   ;;  %s2276_s17 = smov 0  }
   0x4   :  { %s2278_s18 = smov 0   ;;  %s2280_s19 = smov 0  }
   0x5 LB: > { %s1708_s20 = sadd.s32 4294967295, %s2241_s19   ;;  %s1709_s21 = sadd.s32 4294967294, %s2241_s19   ;;  %s2241_s19 = sphi %s2280_s19, %s16_s19   ;;  %s2237_s18 = sphi %s2278_s18, %s2911_s18   ;;  %s2233_s17 = sphi %s2276_s17, %s2910_s17   ;;  %s2229_s16 = sphi %s2274_s16, %s2909_s16   ;;  %s2225_s15 = sphi %s2272_s15, %s2908_s15   ;;  %s2221_s14 = sphi %s2270_s14, %s2907_s14   ;;  %s2217_s13 = sphi %s2268_s13, %s2906_s13   ;;  %s2213_s12 = sphi %s2266_s12, %s2905_s12  }
   0x6   : > { %s25_s22 = sadd.s32 1, %s2233_s17  ;;  %s28_s23 = sadd.s32 1, %s2237_s18 }
   0x7   : > { %p26_p0 = scmp.ge.s32.totalorder %s25_s22, 4  ;;  %p115_p1 = scmp.ne.s32.totalorder %s2221_s14, %s2217_s13 }
   0x8   : > { %p116_p2 = scmp.eq.s32.totalorder %s1708_s20, 7  ;;  %p121_p5 = scmp.ne.s32.totalorder %s2217_s13, %s2213_s12 }
   0x9   : > { %s2913_s22 = smov (%p26_p0, %s25_s22), 0  ;;  %s2915_s23 = smov (!%p26_p0, %s28_s23), %s2237_s18 }
   0xa   : > { %s101_s24 = ssub.s32 %s2233_s17, %s2913_s22  ;;  %p2317_p3 = por %p116_p2, %p115_p1 }
   0xb   : > { %p30_p4 = scmp.ge.s32.totalorder %s2915_s23, 2  ;;  %p122_p6 = scmp.eq.s32.totalorder %s1709_s21, 7 }
   0xc   : > { %p1712_p7 = scmp.ge.s32.totalorder %s2241_s19, 1  ;;  %p154_p9 = scmp.lt.s32.totalorder %s2241_s19, 9 }
   0xd   : > { %s2917_s23 = smov (%p30_p4, %s2915_s23), 0  ;;  %p2326_p8 = por %p122_p6, %p121_p5 }
   0xe   : > { %s100_s27 = ssub.s32 %s2237_s18, %s2917_s23  ;;  %s105_s28 = sadd.s32 1, %s2221_s14 }
   0xf   : > { %s102_s29 = sor.u32 %s101_s24, %s100_s27  ;;  %p155_p10 = pnand %p1712_p7, %p154_p9 }
  0x10   : > { %p103_p11 = scmp.eq.s32.totalorder %s102_s29, 0  ;;  %v1718_v0 = vld [vmem:[%s2896_s1 + $0x2] sm:$0x3] (!%p155_p10)  ;;  %vm328_vm0 = vcmask (!%p155_p10), 1041408   ;;  %v2343_v1 = vld [vmem:[%s2896_s1 + $0x8] sm:$0x3] (!%p155_p10) }
  0x11   : > { %158 = sbr.rel (%p155_p10) target bundleno = 364 (0x16c), region = 32  ;;  %p178_p12 = scmp.lt.s32.totalorder (!%p155_p10), %s2229_s16, 1  ;;  %2051 = vmatprep.subr.msk.bf16.mxu1 (!%p155_p10), %vm328_vm0, %v1718_v0  ;;  %2055 = vmatprep.subr.msk.bf16.mxu0 (!%p155_p10), %vm328_vm0, %v2343_v1  ;;  %v330_v2 = vsel (!%p155_p10), %vm328_vm0, %v1718_v0, 0  ;;  %v2352_v3 = vsel (!%p155_p10), %vm328_vm0, %v2343_v1, 0  ;;  %v201_v4 = vld [vmem:[%s2896_s1] sm:$0x3] (!%p155_p10) }
  0x12   : > { %s2335_s30 = scalar_select %p103_p11, %s2221_s14, %s105_s28  }
  0x13   : > { %1896 = vmatpush3.bf16.msra.mxu1 (!%p155_p10), %v330_v2  ;;  %1936 = vmatpush3.bf16.msra.mxu0 (!%p155_p10), %v2352_v3  ;;  %s1848_s11 = smul.u32 (!%p155_p10), 48, %s2225_s15  ;;  %v2364_v5 = vld [vmem:[%s2896_s1 + $0xa] sm:$0x3] (!%p155_p10)  ;;  %vm202_vm1 = vsmask.f32 (!%p155_p10), 3328  ;;  %vm315_vm3 = vcmask (!%p155_p10), 31744  }
  0x14   : > { %2052 = vmatprep.subr.msk.bf16.mxu1 (!%p155_p10), %vm328_vm0, %v201_v4  ;;  %2057 = vmatprep.subr.msk.bf16.mxu0 (!%p155_p10), %vm328_vm0, %v2364_v5  ;;  %vm203_vm2 = vsmask.f32 (!%p155_p10), 7440  ;;  %v2414_v35 = vsel (!%p155_p10), %vm328_vm0, %v201_v4, 0  ;;  %v2443_v63 = vsel (!%p155_p10), %vm328_vm0, %v2364_v5, 0  ;;  %vm501_vm5 = vcmask (!%p155_p10), 1042432   ;;  %s1849_s9 = sshll.u32 (!%p155_p10), %s2225_s15, 3 }
  0x15   : > { %vm2409_vm4 = vmor (!%p155_p10), %vm202_vm1, %vm203_vm2  ;;  %vm502_vm6 = vcmask (!%p155_p10), 1046532   ;;  %s1844_s10 = sshll.u32 (!%p155_p10), %s2229_s16, 5  ;;  %s2243_s5 = smov (!%p155_p10), [#allocation2]  }
  0x16   : > { %vm2501_vm7 = vmor (!%p155_p10), %vm501_vm5, %vm502_vm6  ;;  %s1619_s15 = sadd.s32 (!%p155_p10), %s1849_s9, %s1844_s10 }
  0x18   : > { %s179_s8 = scalar_select %p178_p12, %s2229_s16, 1 }
  0x19   : > { %s1845_s16 = sshll.u32 %s1619_s15, 7 }
  0x1a   : > { %s2061_s24 = smul.u32 216, %s179_s8  ;;  %s2834_s27 = scalar_lea.hbm %s2898_s3, %s1845_s16 }
  0x1c   : > { %s182_s29 = scalar_lea.vmem %s2895_s0, %s2061_s24 }
  0x1d   : > { %s2371_s4 = scalar_lea.vmem %s182_s29, %s1848_s11  ;;  %s175_s29 = sand.u32 1, %s2217_s13  }
  0x1e   : > { %v2374_v6 = vld [vmem:[%s2371_s4] sm:$0xf]  ;;  %v2377_v7 = vld [vmem:[%s2371_s4 + $0x4] sm:$0xf]  ;;  %v2380_v8 = vld [vmem:[%s2371_s4 + $0x8] sm:$0x1] }
  0x1f   : > { %v206_v9 = vshrl.u32 %v2374_v6, 16  ;;  %v209_v10 = vshll.u32 %v2374_v6, 16  ;;  %v215_v11 = vshll.u32 %v2377_v7, 16  ;;  %v219_v12 = vshrl.u32 %v2377_v7, 16  ;;  %v2387_v13 = vld [vmem:[%s2371_s4 + $0xc] sm:$0xf] }
  0x20   : > { %v225_v14 = vshll.u32 %v2380_v8, 16  ;;  %v2391_v15 = vld [vmem:[%s2371_s4 + $0x10] sm:$0xf]  ;;  %v2394_v16 = vld [vmem:[%s2371_s4 + $0x14] sm:$0x1]  ;;  %v761_v22 = vshrl.u32 %v2387_v13, 16 }
  0x21   : > { %v208_v17 = vrot.slane %v206_v9, 4  ;;  %v211_v18 = vrot.slane %v209_v10, 5  ;;  %v217_v19 = vrot.slane %v215_v11, 5  ;;  %v221_v20 = vrot.slane %v219_v12, 4  ;;  %v2402_v29 = vld [vmem:[%s2371_s4 + $0xc] sm:$0xf] }
  0x22   : > { %v227_v21 = vrot.slane %v225_v14, 5  ;;  %v764_v23 = vshll.u32 %v2387_v13, 16  ;;  %v770_v24 = vshll.u32 %v2391_v15, 16  ;;  %v774_v27 = vshrl.u32 %v2391_v15, 16  ;;  %v2405_v30 = vld [vmem:[%s2371_s4 + $0x10] sm:$0xf] }
  0x23   : > { %v212_v25 = vor.u32 %v211_v18, %v208_v17  ;;  %v222_v26 = vor.u32 %v221_v20, %v217_v19  ;;  %v780_v28 = vshll.u32 %v2394_v16, 16  ;;  %v763_v32 = vrot.slane %v761_v22, 4  ;;  %v2417_v41 = vld [vmem:[%s2371_s4 + $0x14] sm:$0x1]  ;;  %v2428_v53 = vld [vmem:[%s2371_s4 + $0x18] sm:$0xf] }
  0x24   : > { %v766_v33 = vrot.slane %v764_v23, 5  ;;  %v772_v34 = vrot.slane %v770_v24, 5  ;;  %v776_v38 = vrot.slane %v774_v27, 4  ;;  %v230_v42 = vshrl.u32 %v2402_v29, 16  ;;  %v2432_v58 = vld [vmem:[%s2371_s4 + $0x1c] sm:$0xf] }
  0x25   : > { %v213_v36 = vrot.slane %v212_v25, 4  ;;  %v223_v37 = vrot.slane %v222_v26, 4  ;;  %v782_v39 = vrot.slane %v780_v28, 5  ;;  %v233_v43 = vshll.u32 %v2402_v29, 16  ;;  %v2439_v62 = vld [vmem:[%s2371_s4 + $0x20] sm:$0x1] }
  0x26   : > { %v767_v40 = vor.u32 %v766_v33, %v763_v32  ;;  %v239_v44 = vshll.u32 %v2405_v30, 16  ;;  %v777_v47 = vor.u32 %v776_v38, %v772_v34  ;;  %v243_v48 = vshrl.u32 %v2405_v30, 16  ;;  %v2451_v17 = vld [vmem:[%s2371_s4 + $0x18] sm:$0xf]  ;;  %v2463_v26 = vld [vmem:[%s2371_s4 + $0x20] sm:$0x1] }
  0x27   : > { %v218_v45 = vsel %vm2409_vm4, %v213_v36, %v217_v19  ;;  %v228_v46 = vsel %vm2409_vm4, %v223_v37, %v227_v21  ;;  %v232_v51 = vrot.slane %v230_v42, 4  ;;  %v235_v52 = vrot.slane %v233_v43, 5  ;;  %v2456_v21 = vld [vmem:[%s2371_s4 + $0x1c] sm:$0xf]  ;;  %s1713_s6 = sshll.u32 %s175_s29, 6  ;;  %s2843_s28 = scalar_lea.sflag [#allocation3], %s175_s29 }
  0x28   : > { %v1719_v49 = vcombine.low %v218_v45, %v228_v46  ;;  %v768_v50 = vrot.slane %v767_v40, 4  ;;  %v778_v54 = vrot.slane %v777_v47, 4  ;;  %v241_v55 = vrot.slane %v239_v44, 5  ;;  %v2476_v40 = vld [vmem:[%s2896_s1 + $0x4] sm:$0x3]  ;;  %s2823_s11 = scalar_lea.vmem [#allocation2], %s1713_s6 }
  0x29   : > { %v245_v56 = vrot.slane %v243_v48, 4  ;;  %v249_v57 = vshll.u32 %v2417_v41, 16  ;;  %v967_v60 = vrot.slane %v2394_v16, 5  ;;  %v236_v61 = vor.u32 %v235_v52, %v232_v51  ;;  %v2481_v46 = vld [vmem:[%s2371_s4 + $0x28] sm:$0xf]  ;;  %s1622_s20 = sshll.u32 %s2823_s11, 4  ;;  %s2836_s20 = int_to_ptr.vmem [resolvable:$true] %s1622_s20 }
  0x2a   : > { %1897 = vmatprep.mubr.msk.bf16.mxu1 %vm315_vm3, %v1719_v49  ;;  %v773_v59 = vsel %vm2409_vm4, %v768_v50, %v772_v34  ;;  %v783_v0 = vsel %vm2409_vm4, %v778_v54, %v782_v39  ;;  %v785_v9 = vshrl.u32 %v2428_v53, 16  ;;  %v788_v12 = vshll.u32 %v2428_v53, 16  ;;  %v2469_v34 = vld [vmem:[%s2371_s4 + $0x24] sm:$0xf]  ;;  %s2151_s6 = sshll.u32 %s2243_s5, 4  ;;  %s2152_s6 = int_to_ptr.vmem [resolvable:$false] %s2151_s6 }
  0x2b   : > { %v246_v2 = vor.u32 %v245_v56, %v241_v55  ;;  %v251_v4 = vrot.slane %v249_v57, 5  ;;  %v1772_v10 = vcombine.low %v773_v59, %v783_v0  ;;  %v237_v11 = vrot.slane %v236_v61, 4  ;;  %s2153_s7 = scalar_lea.vmem %s2152_s6, 2048  ;;  %p2154_p2 = scmp.lt.s32.totalorder %s2836_s20, %s2152_s6 }
  0x2c   : > { %v794_v14 = vshll.u32 %v2432_v58, 16  ;;  %v787_v18 = vrot.slane %v785_v9, 4  ;;  %v798_v19 = vshrl.u32 %v2432_v58, 16  ;;  %v804_v20 = vshll.u32 %v2439_v62, 16 }
  0x2d   : > { %v247_v5 = vrot.slane %v246_v2, 4  ;;  %1937 = vmatprep.mubr.msk.bf16.mxu0 %vm315_vm3, %v1772_v10  ;;  %v242_v22 = vsel %vm2409_vm4, %v237_v11, %v241_v55  ;;  %v790_v23 = vrot.slane %v788_v12, 5  ;;  %v974_v25 = vrot.slane %v2439_v62, 5  ;;  %v2487_v55 = vld [vmem:[%s2371_s4 + $0x2c] sm:$0x1] }
  0x2e   : > { %v796_v24 = vrot.slane %v794_v14, 5  ;;  %v800_v28 = vrot.slane %v798_v19, 4  ;;  %v806_v32 = vrot.slane %v804_v20, 5  ;;  %v254_v33 = vshrl.u32 %v2451_v17, 16 }
  0x2f   : > { %v252_v27 = vsel %vm2409_vm4, %v247_v5, %v251_v4  ;;  %v791_v37 = vor.u32 %v790_v23, %v787_v18  ;;  %v257_v38 = vshll.u32 %v2451_v17, 16  ;;  %v263_v39 = vshll.u32 %v2456_v21, 16  ;;  %v1807_v23 = vld [vmem:[%s2896_s1 + $0xc] sm:$0x3] }
  0x30   : > { %v1720_v36 = vcombine.low %v242_v22, %v252_v27  ;;  %v801_v42 = vor.u32 %v800_v28, %v796_v24  ;;  %v256_v43 = vrot.slane %v254_v33, 4  ;;  %v267_v44 = vshrl.u32 %v2456_v21, 16  ;;  %v2515_v33 = vld [vmem:[%s2371_s4 + $0x24] sm:$0xf] }
  0x31   : > { %v273_v45 = vshll.u32 %v2463_v26, 16  ;;  %v792_v47 = vrot.slane %v791_v37, 4  ;;  %v259_v48 = vrot.slane %v257_v38, 5  ;;  %v265_v49 = vrot.slane %v263_v39, 5 }
  0x32   : > { %1898 = vmatmul.mubr.msk.bf16.vlgmr.msra.gmra.mrb[0].mxu1 %vm315_vm3, %v1720_v36  ;;  %v278_v50 = vshrl.u32 %v2469_v34, 16  ;;  %v802_v51 = vrot.slane %v801_v42, 4  ;;  %v269_v52 = vrot.slane %v267_v44, 4  ;;  %v281_v56 = vshll.u32 %v2469_v34, 16  ;;  %v2522_v42 = vld [vmem:[%s2371_s4 + $0x28] sm:$0xf] }
  0x33   : > { %1906 = vmatpush3.bf16.msra.mxu1 %v2414_v35  ;;  %v275_v54 = vrot.slane %v273_v45, 5  ;;  %v797_v57 = vsel %vm2409_vm4, %v792_v47, %v796_v24  ;;  %v260_v59 = vor.u32 %v259_v48, %v256_v43  ;;  %v287_v0 = vshll.u32 %v2481_v46, 16  ;;  %v2525_v43 = vld [vmem:[%s2371_s4 + $0x2c] sm:$0x1] }
  0x34   : > { %v280_v61 = vrot.slane %v278_v50, 4  ;;  %2053 = vmatprep.subr.msk.bf16.mxu1 %vm328_vm0, %v2476_v40  ;;  %v807_v35 = vsel %vm2409_vm4, %v802_v51, %v806_v32  ;;  %v270_v2 = vor.u32 %v269_v52, %v265_v49  ;;  %v283_v4 = vrot.slane %v281_v56, 5 }
  0x35   : > { %v291_v9 = vshrl.u32 %v2481_v46, 16  ;;  %v1773_v10 = vcombine.low %v797_v57, %v807_v35  ;;  %v261_v11 = vrot.slane %v260_v59, 4  ;;  %v289_v12 = vrot.slane %v287_v0, 5  ;;  %v2551_v0 = vld [vmem:[%s2371_s4 + $0x30] sm:$0xf] }
  0x36   : > { %v297_v14 = vshll.u32 %v2487_v55, 16  ;;  %v271_v5 = vrot.slane %v270_v2, 4  ;;  %v284_v18 = vor.u32 %v283_v4, %v280_v61  ;;  %v1780_v22 = vrot.slane %v2387_v13, 9 }
  0x37   : > { %v293_v19 = vrot.slane %v291_v9, 4  ;;  %1938 = vmatmul.mubr.msk.bf16.vlgmr.msra.gmra.mrb[0].mxu0 %vm315_vm3, %v1773_v10  ;;  %v266_v24 = vsel %vm2409_vm4, %v261_v11, %v265_v49  ;;  %v964_v28 = vrot.slane %v2391_v15, 5  ;;  %v1781_v32 = vrot.slane %v2428_v53, 9  ;;  %v2560_v9 = vld [vmem:[%s2371_s4 + $0x38] sm:$0x1] }
  0x38   : > { %v299_v27 = vrot.slane %v297_v14, 5  ;;  %1946 = vmatpush3.bf16.msra.mxu0 %v2443_v63  ;;  %v276_v36 = vsel %vm2409_vm4, %v271_v5, %v275_v54  ;;  %v285_v37 = vrot.slane %v284_v18, 4  ;;  %v971_v39 = vrot.slane %v2432_v58, 5  ;;  %v1762_v5 = vld [vmem:[%s2896_s1 + $0x6] sm:$0x3] }
  0x39   : > { %v294_v38 = vor.u32 %v293_v19, %v289_v12  ;;  %v1721_v44 = vcombine.low %v266_v24, %v276_v36  ;;  %v965_v45 = vsel %vm2501_vm7, %v1780_v22, %v964_v28  ;;  %v966_v47 = vrot.slane %v964_v28, 4  ;;  %2058 = vmatprep.subr.msk.bf16.mxu0 %vm328_vm0, %v1807_v23 }
  0x3a   : > { %v290_v63 = vsel %vm2409_vm4, %v285_v37, %v289_v12  ;;  %v973_v49 = vrot.slane %v971_v39, 4  ;;  %v1727_v50 = vcombine.low %v2374_v6, %v2377_v7  ;;  %v1782_v52 = vrot.slane %v2515_v33, 9  ;;  %v1816_v12 = vld [vmem:[%s2896_s1 + $0xe] sm:$0x3]  ;;  %v2589_v37 = vld [vmem:[%s2371_s4 + $0x18] sm:$0xf] }
  0x3b   : > { %v295_v48 = vrot.slane %v294_v38, 4  ;;  %1901 = vmatprep.mubr.msk.bf16.mxu1 %vm315_vm3, %v1721_v44  ;;  %v968_v51 = vsel %vm2501_vm7, %v966_v47, %v967_v60  ;;  %v978_v54 = vrot.slane %v2522_v42, 5  ;;  %v981_v56 = vrot.slane %v2525_v43, 5  ;;  %v2554_v60 = vld [vmem:[%s2371_s4 + $0x34] sm:$0xf] }
  0x3c   : > { %v1785_v59 = vcombine.low %v965_v45, %v968_v51  ;;  %v972_v61 = vsel %vm2501_vm7, %v1781_v32, %v971_v39  ;;  %v975_v16 = vsel %vm2501_vm7, %v973_v49, %v974_v25  ;;  %v1783_v25 = vrot.slane %v2551_v0, 9  ;;  %v2592_v38 = vld [vmem:[%s2371_s4 + $0x1c] sm:$0xf]  ;;  %v2606_v45 = vld [vmem:[%s2371_s4 + $0x24] sm:$0xf] }
  0x3d   : > { %v300_v57 = vsel %vm2409_vm4, %v295_v48, %v299_v27  ;;  %v979_v2 = vsel %vm2501_vm7, %v1782_v52, %v978_v54  ;;  %v980_v4 = vrot.slane %v978_v54, 4  ;;  %v1786_v10 = vcombine.low %v972_v61, %v975_v16  ;;  %v2609_v47 = vld [vmem:[%s2371_s4 + $0x28] sm:$0xf] }
  0x3e   : > { %v1722_v35 = vcombine.low %v290_v63, %v300_v57  ;;  %1947 = vmatprep.mubr.msk.bf16.mxu0 %vm315_vm3, %v1785_v59  ;;  %v985_v11 = vrot.slane %v2554_v60, 5  ;;  %v513_v18 = vrot.slane %v2405_v30, 5  ;;  %v1143_v19 = vsel %vm328_vm0, %v1807_v23, 0  ;;  %v2624_v57 = vld [vmem:[%s2371_s4 + $0x34] sm:$0xf] }
  0x3f   : > { %v982_v62 = vsel %vm2501_vm7, %v980_v4, %v981_v56  ;;  %v988_v24 = vrot.slane %v2560_v9, 5  ;;  %v559_v27 = vsel %vm328_vm0, %v2476_v40, 0  ;;  %v2580_v28 = vsel %vm328_vm0, %v1816_v12, 0 }
  0x40   : > { %1902 = vmatmul.mubr.msk.bf16.gmra.mrb[4].mxu1 %vm315_vm3, %v1722_v35  ;;  %v1787_v14 = vcombine.low %v979_v2, %v982_v62  ;;  %v987_v22 = vrot.slane %v985_v11, 4  ;;  %v516_v32 = vrot.slane %v2417_v41, 5  ;;  %v1728_v36 = vcombine.low %v2402_v29, %v2405_v30 }
  0x41   : > { %1907 = vmatprep.mubr.msk.bf16.mxu1 %vm315_vm3, %v1727_v50  ;;  %v986_v23 = vsel %vm2501_vm7, %v1783_v25, %v985_v11  ;;  %v2595_v40 = vsel %vm328_vm0, %v1762_v5, 0  ;;  %v509_v39 = vrot.slane %v2380_v8, 5  ;;  %v1729_v41 = vcombine.low %v2451_v17, %v2456_v21  ;;  %v2616_v50 = vld [vmem:[%s2371_s4 + $0x30] sm:$0xf] }
  0x42   : > { %v989_v30 = vsel %vm2501_vm7, %v987_v22, %v988_v24  ;;  %v1730_v44 = vcombine.low %v2469_v34, %v2481_v46  ;;  %v1735_v8 = vrot.slane %v2374_v6, 9  ;;  %v506_v63 = vrot.slane %v2377_v7, 5 }
  0x43   : > { %1948 = vmatmul.mubr.msk.bf16.vlgmr.msra.gmra.mrb[0].mxu0 %vm315_vm3, %v1786_v10  ;;  %v1736_v48 = vrot.slane %v2402_v29, 9  ;;  %v515_v49 = vrot.slane %v513_v18, 4  ;;  %v1808_v51 = vcombine.low %v2589_v37, %v2592_v38  ;;  %v1219_v52 = vshrl.u32 %v2589_v37, 16 }
  0x44   : > { %1956 = vmatpush3.bf16.msra.mxu0 %v1143_v19  ;;  %1951 = vmatprep.mubr.msk.bf16.mxu0 %vm315_vm3, %v1787_v14  ;;  %v1222_v54 = vshll.u32 %v2589_v37, 16  ;;  %v1232_v56 = vshrl.u32 %v2592_v38, 16  ;;  %v1788_v6 = vcombine.low %v986_v23, %v989_v30  ;;  %v508_v7 = vrot.slane %v506_v63, 4  ;;  %v2655_v19 = vld [vmem:[%s2371_s4 + $0x20] sm:$0x1] }
  0x45   : > { %2059 = vmatprep.subr.msk.bf16.mxu0 %vm328_vm0, %v1816_v12  ;;  %v2629_v29 = vsel %vm2501_vm7, %v1736_v48, %v513_v18  ;;  %v2633_v59 = vsel %vm2501_vm7, %v515_v49, %v516_v32  ;;  %v1809_v61 = vcombine.low %v2606_v45, %v2609_v47  ;;  %v1243_v16 = vshrl.u32 %v2606_v45, 16 }
  0x46   : > { %v1246_v35 = vshll.u32 %v2606_v45, 16  ;;  %v1256_v2 = vshrl.u32 %v2609_v47, 16  ;;  %v507_v4 = vsel %vm2501_vm7, %v1735_v8, %v506_v63  ;;  %v510_v10 = vsel %vm2501_vm7, %v508_v7, %v509_v39 }
  0x47   : > { %v1810_v62 = vcombine.low %v2616_v50, %v2624_v57  ;;  %v520_v25 = vrot.slane %v2456_v21, 5  ;;  %v1741_v11 = vcombine.low %v2629_v29, %v2633_v59  ;;  %v1267_v12 = vshrl.u32 %v2616_v50, 16 }
  0x48   : > { %1908 = vmatmul.mubr.msk.bf16.vlgmr.msra.gmra.mrb[0].mxu1 %vm315_vm3, %v1728_v36  ;;  %v1270_v14 = vshll.u32 %v2616_v50, 16  ;;  %v1280_v18 = vshrl.u32 %v2624_v57, 16  ;;  %v1737_v22 = vrot.slane %v2451_v17, 9  ;;  %v523_v21 = vrot.slane %v2463_v26, 5  ;;  %v2665_v36 = vld [vmem:[%s2371_s4 + $0x40] sm:$0xf] }
  0x49   : > { %1916 = vmatpush3.bf16.msra.mxu1 %v559_v27  ;;  %1911 = vmatprep.mubr.msk.bf16.mxu1 %vm315_vm3, %v1729_v41  ;;  %v522_v24 = vrot.slane %v520_v25, 4  ;;  %v1221_v27 = vrot.slane %v1219_v52, 4  ;;  %v1740_v32 = vcombine.low %v507_v4, %v510_v10  ;;  %v1224_v39 = vrot.slane %v1222_v54, 5  ;;  %v2672_v17 = vld [vmem:[%s2371_s4 + $0x2c] sm:$0x1] }
  0x4a   : > { %2054 = vmatprep.subr.msk.bf16.mxu1 %vm328_vm0, %v1762_v5  ;;  %v2659_v5 = vld [vmem:[%s2371_s4 + $0x3c] sm:$0xf]  ;;  %v1228_v30 = vshll.u32 %v2592_v38, 16  ;;  %v1234_v8 = vrot.slane %v1232_v56, 4  ;;  %v1238_v63 = vshll.u32 %v2655_v19, 16  ;;  %v1245_v48 = vrot.slane %v1243_v16, 4 }
  0x4b   : > { %1952 = vmatmul.mubr.msk.bf16.gmra.mrb[4].mxu0 %vm315_vm3, %v1788_v6  ;;  %v1291_v23 = vshrl.u32 %v2659_v5, 16  ;;  %v1294_v41 = vshll.u32 %v2659_v5, 16  ;;  %v1304_v26 = vshrl.u32 %v2665_v36, 16  ;;  %v527_v49 = vrot.slane %v2481_v46, 5 }
  0x4c   : > { %1957 = vmatprep.mubr.msk.bf16.mxu0 %vm315_vm3, %v1808_v51  ;;  %v1225_v51 = vor.u32 %v1224_v39, %v1221_v27  ;;  %v1230_v52 = vrot.slane %v1228_v30, 5  ;;  %v521_v54 = vsel %vm2501_vm7, %v1737_v22, %v520_v25  ;;  %v524_v6 = vsel %vm2501_vm7, %v522_v24, %v523_v21  ;;  %v1829_v25 = vld [vmem:[%s2896_s1 + $0x10] sm:$0x3]  ;;  %v2690_v30 = vld [vmem:[%s2371_s4 + $0x38] sm:$0x1] }
  0x4d   : > { %v1248_v56 = vrot.slane %v1246_v35, 5  ;;  %v1252_v7 = vshll.u32 %v2609_v47, 16  ;;  %v1258_v10 = vrot.slane %v1256_v2, 4  ;;  %v1262_v46 = vshll.u32 %v2672_v17, 16 }
  0x4e   : > { %v1226_v16 = vrot.slane %v1225_v51, 4  ;;  %v1235_v4 = vor.u32 %v1234_v8, %v1230_v52  ;;  %v1738_v27 = vrot.slane %v2469_v34, 9  ;;  %v529_v21 = vrot.slane %v527_v49, 4 }
  0x4f   : > { %v1249_v22 = vor.u32 %v1248_v56, %v1245_v48  ;;  %v1254_v24 = vrot.slane %v1252_v7, 5  ;;  %v530_v35 = vrot.slane %v2487_v55, 5  ;;  %v1742_v2 = vcombine.low %v521_v54, %v524_v6 }
  0x50   : > { %1912 = vmatmul.mubr.msk.bf16.gmra.mrb[4].mxu1 %vm315_vm3, %v1730_v44  ;;  %v1240_v44 = vrot.slane %v1238_v63, 5  ;;  %v1236_v39 = vrot.slane %v1235_v4, 4  ;;  %v1272_v34 = vrot.slane %v1270_v14, 5  ;;  %v1276_v63 = vshll.u32 %v2624_v57, 16 }
  0x51   : > { %1917 = vmatprep.mubr.msk.bf16.mxu1 %vm315_vm3, %v1740_v32  ;;  %v1269_v32 = vrot.slane %v1267_v12, 4  ;;  %v1259_v8 = vor.u32 %v1258_v10, %v1254_v24  ;;  %v1231_v48 = vsel %vm2409_vm4, %v1226_v16, %v1230_v52  ;;  %v1250_v55 = vrot.slane %v1249_v22, 4 }
  0x52   : > { %v1264_v51 = vrot.slane %v1262_v46, 5  ;;  %v1282_v56 = vrot.slane %v1280_v18, 4  ;;  %v1241_v12 = vsel %vm2409_vm4, %v1236_v39, %v1240_v44  ;;  %v1286_v14 = vshll.u32 %v2690_v30, 16 }
  0x53   : > { %1958 = vmatmul.mubr.msk.bf16.vlgmr.msra.gmra.mrb[0].mxu0 %vm315_vm3, %v1809_v61  ;;  %v1273_v61 = vor.u32 %v1272_v34, %v1269_v32  ;;  %v1293_v54 = vrot.slane %v1291_v23, 4  ;;  %v1260_v6 = vrot.slane %v1259_v8, 4  ;;  %v1278_v7 = vrot.slane %v1276_v63, 5 }
  0x54   : > { %1966 = vmatpush3.bf16.msra.mxu0 %v2580_v28  ;;  %1961 = vmatprep.mubr.msk.bf16.mxu0 %vm315_vm3, %v1810_v62  ;;  %v2703_v28 = vld [vmem:[%s2371_s4 + $0x44] sm:$0x1]  ;;  %v1296_v62 = vrot.slane %v1294_v41, 5  ;;  %v1300_v4 = vshll.u32 %v2665_v36, 16  ;;  %v1811_v18 = vcombine.low %v2659_v5, %v2665_v36  ;;  %v528_v52 = vsel %vm2501_vm7, %v1738_v27, %v527_v49  ;;  %s2147_s4 = scalar_lea.vmem %s2836_s20, 1024 }
  0x55   : > { %2060 = vmatprep.subr.msk.bf16.mxu0 %vm328_vm0, %v1829_v25  ;;  %v1306_v16 = vrot.slane %v1304_v26, 4  ;;  %v531_v23 = vsel %vm2501_vm7, %v529_v21, %v530_v35  ;;  %v1817_v41 = vcombine.low %v1231_v48, %v1241_v12  ;;  %v1283_v10 = vor.u32 %v1282_v56, %v1278_v7  ;;  %p2148_p13 = scmp.ne.s32.totalorder %s2836_s20, %s2147_s4  ;;  %p2155_p4 = scmp.lt.s32.totalorder %s2153_s7, %s2147_s4 }
  0x56   : > { %v2718_v46 = vrot.slane %v1300_v4, 5  ;;  %v1274_v29 = vrot.slane %v1273_v61, 4  ;;  %v1288_v59 = vrot.slane %v1286_v14, 5  ;;  %v1255_v26 = vsel %vm2409_vm4, %v1250_v55, %v1254_v24 }
  0x57   : > { %v1284_v49 = vrot.slane %v1283_v10, 4  ;;  %v1297_v27 = vor.u32 %v1296_v62, %v1293_v54  ;;  %v1743_v44 = vcombine.low %v528_v52, %v531_v23  ;;  %v1763_v21 = vcombine.low %v2387_v13, %v2391_v15  ;;  %p2149_p0 = pnand %p2148_p13, %p2317_p3  ;;  %p2156_p5 = por %p2155_p4, %p2154_p2 }
  0x58   : > { %1918 = vmatmul.mubr.msk.bf16.vlgmr.msra.gmra.mrb[0].mxu1 %vm315_vm3, %v1741_v11  ;;  %v1310_v11 = vshll.u32 %v2703_v28, 16  ;;  %v1307_v22 = vor.u32 %v1306_v16, %v2718_v46  ;;  %v1422_v35 = vrot.slane %v2592_v38, 5  ;;  %v1279_v39 = vsel %vm2409_vm4, %v1274_v29, %v1278_v7 }
  0x59   : > { %1926 = vmatpush3.bf16.msra.mxu1 %v2595_v40  ;;  %1921 = vmatprep.mubr.msk.bf16.mxu1 %vm315_vm3, %v1742_v2  ;;  %v1265_v40 = vsel %vm2409_vm4, %v1260_v6, %v1264_v51  ;;  %v1289_v32 = vsel %vm2409_vm4, %v1284_v49, %v1288_v59  ;;  %v1298_v8 = vrot.slane %v1297_v27, 4  ;;  %v1825_v34 = vrot.slane %v2589_v37, 9  ;;  %p2150_p1 = pneg %p2149_p0 }
  0x5a   : > { %2056 = vmatprep.subr.msk.bf16.mxu1 %vm328_vm0, %v2343_v1  ;;  %v1475_v1 = vsel %vm328_vm0, %v1829_v25, 0  ;;  %v1818_v24 = vcombine.low %v1255_v26, %v1265_v40  ;;  %v1312_v2 = vrot.slane %v1310_v11, 5  ;;  %v809_v63 = vshrl.u32 %v2515_v33, 16 }
  0x5b   : > { %1962 = vmatmul.mubr.msk.bf16.gmra.mrb[4].mxu0 %vm315_vm3, %v1811_v18  ;;  %v812_v25 = vshll.u32 %v2515_v33, 16  ;;  %v1308_v13 = vrot.slane %v1307_v22, 4  ;;  %v1425_v15 = vrot.slane %v2655_v19, 5  ;;  %v818_v38 = vshll.u32 %v2522_v42, 16  ;;  %p2157_p6 = pnand %p2156_p5, %p2150_p1 }
  0x5c   : > { %1967 = vmatprep.mubr.msk.bf16.mxu0 %vm315_vm3, %v1817_v41  ;;  %v822_v48 = vshrl.u32 %v2522_v42, 16  ;;  %v1819_v55 = vcombine.low %v1279_v39, %v1289_v32  ;;  %v1424_v51 = vrot.slane %v1422_v35, 4  ;;  %v811_v56 = vrot.slane %v809_v63, 4 }
  0x5d   : > { %v814_v12 = vrot.slane %v812_v25, 5  ;;  %v833_v37 = vshrl.u32 %v2551_v0, 16  ;;  %v820_v61 = vrot.slane %v818_v38, 5  ;;  %v828_v54 = vshll.u32 %v2525_v43, 16 }
  0x5e   : > { %v824_v14 = vrot.slane %v822_v48, 4  ;;  %v836_v6 = vshll.u32 %v2551_v0, 16  ;;  %v842_v19 = vshll.u32 %v2554_v60, 16  ;;  %v846_v7 = vshrl.u32 %v2554_v60, 16 }
  0x5f   : > { %v815_v62 = vor.u32 %v814_v12, %v811_v56  ;;  %v1764_v4 = vcombine.low %v2428_v53, %v2432_v58  ;;  %v1303_v18 = vsel %vm2409_vm4, %v1298_v8, %v2718_v46  ;;  %v1765_v52 = vcombine.low %v2515_v33, %v2522_v42 }
  0x60   : > { %1922 = vmatmul.mubr.msk.bf16.gmra.mrb[4].mxu1 %vm315_vm3, %v1743_v44  ;;  %v825_v43 = vor.u32 %v824_v14, %v820_v61  ;;  %v1313_v16 = vsel %vm2409_vm4, %v1308_v13, %v1312_v2  ;;  %v1423_v23 = vsel %vm2501_vm7, %v1825_v34, %v1422_v35  ;;  %v1426_v53 = vsel %vm2501_vm7, %v1424_v51, %v1425_v15 }
  0x61   : > { %1927 = vmatprep.mubr.msk.bf16.mxu1 %vm315_vm3, %v1763_v21  ;;  %v1429_v58 = vrot.slane %v2609_v47, 5  ;;  %v816_v41 = vrot.slane %v815_v62, 4  ;;  %v830_v46 = vrot.slane %v828_v54, 5  ;;  %v1436_v33 = vrot.slane %v2624_v57, 5  ;;  %v1839_v62 = vld [vmem:[%s2897_s2 + $0x1] ss:$0 sm:$0xff] }
  0x62   : > { %v826_v10 = vrot.slane %v825_v43, 4  ;;  %v835_v42 = vrot.slane %v833_v37, 4  ;;  %v838_v29 = vrot.slane %v836_v6, 5  ;;  %v844_v59 = vrot.slane %v842_v19, 5  ;;  %v1838_v37 = vld [vmem:[%s2897_s2] ss:$0 sm:$0xff] }
  0x63   : > { %1968 = vmatmul.mubr.msk.bf16.vlgmr.msra.gmra.mrb[0].mxu0 %vm315_vm3, %v1818_v24  ;;  %v848_v11 = vrot.slane %v846_v7, 4  ;;  %v1820_v26 = vcombine.low %v1303_v18, %v1313_v16  ;;  %v1826_v40 = vrot.slane %v2606_v45, 9  ;;  %v1830_v49 = vcombine.low %v1423_v23, %v1426_v53  ;;  %v1840_v16 = vld [vmem:[%s2897_s2 + $0x2] ss:$0 sm:$0xff] }
  0x64   : > { %1976 = vmatpush3.bf16.msra.mxu0 %v1475_v1  ;;  %1971 = vmatprep.mubr.msk.bf16.mxu0 %vm315_vm3, %v1819_v55  ;;  %v1431_v47 = vrot.slane %v1429_v58, 4  ;;  %v1432_v27 = vrot.slane %v2672_v17, 5  ;;  %v1827_v44 = vrot.slane %v2616_v50, 9  ;;  %v821_v57 = vsel %vm2409_vm4, %v816_v41, %v820_v61 }
  0x65   : > { %v831_v22 = vsel %vm2409_vm4, %v826_v10, %v830_v46  ;;  %v1438_v1 = vrot.slane %v1436_v33, 4  ;;  %v1439_v21 = vrot.slane %v2690_v30, 5  ;;  %v852_v45 = vshll.u32 %v2560_v9, 16 }
  0x66   : > { %v1430_v17 = vsel %vm2501_vm7, %v1826_v40, %v1429_v58  ;;  %v839_v50 = vor.u32 %v838_v29, %v835_v42  ;;  %v1433_v35 = vsel %vm2501_vm7, %v1431_v47, %v1432_v27  ;;  %v1774_v24 = vcombine.low %v821_v57, %v831_v22 }
  0x67   : > { %v849_v39 = vor.u32 %v848_v11, %v844_v59  ;;  %v1443_v30 = vrot.slane %v2665_v36, 5  ;;  %v1437_v9 = vsel %vm2501_vm7, %v1827_v44, %v1436_v33  ;;  %v1440_v32 = vsel %vm2501_vm7, %v1438_v1, %v1439_v21 }
  0x68   : > { %1928 = vmatmul.mubr.msk.bf16.vlgmr.msra.gmra.mrb[0].mxu1 %vm315_vm3, %v1764_v4  ;;  %v840_v2 = vrot.slane %v839_v50, 4  ;;  %v1828_v8 = vrot.slane %v2659_v5, 9  ;;  %v1832_v34 = vcombine.low %v1437_v9, %v1440_v32  ;;  %v1446_v36 = vrot.slane %v2703_v28, 5 }
  0x69   : > { %1986 = vmatpush3.bf16.msra.mxu1 %v2352_v3  ;;  %1931 = vmatprep.mubr.msk.bf16.mxu1 %vm315_vm3, %v1765_v52  ;;  %v1766_v3 = vcombine.low %v2551_v0, %v2554_v60  ;;  %v854_v0 = vrot.slane %v852_v45, 5  ;;  %v1831_v60 = vcombine.low %v1430_v17, %v1433_v35  ;;  %v850_v63 = vrot.slane %v849_v39, 4 }
  0x6a   : > { %v1445_v25 = vrot.slane %v1443_v30, 4  ;;  %v845_v13 = vsel %vm2409_vm4, %v840_v2, %v844_v59  ;;  %v1444_v5 = vsel %vm2501_vm7, %v1828_v8, %v1443_v30 }
  0x6b   : > { %1972 = vmatmul.mubr.msk.bf16.gmra.mrb[4].mxu0 %vm315_vm3, %v1820_v26  ;;  %v855_v15 = vsel %vm2409_vm4, %v850_v63, %v854_v0 }
  0x6c   : > { %1977 = vmatprep.mubr.msk.bf16.mxu0 %vm315_vm3, %v1830_v49  ;;  %v1447_v38 = vsel %vm2501_vm7, %v1445_v25, %v1446_v36  ;;  %v1775_v48 = vcombine.low %v845_v13, %v855_v15 }
  0x6d   : > { %v1833_v55 = vcombine.low %v1444_v5, %v1447_v38 }
  0x70   : > { %1932 = vmatmul.mubr.msk.bf16.gmra.mrb[4].mxu1 %vm315_vm3, %v1766_v3 }
  0x71   : > { %1941 = vmatprep.mubr.msk.bf16.mxu1 %vm315_vm3, %v1774_v24 }
  0x73   : > { %1978 = vmatmul.mubr.msk.bf16.vlgmr.msra.gmra.mrb[0].mxu0 %vm315_vm3, %v1831_v60 }
  0x74   : > { %1981 = vmatprep.mubr.msk.bf16.mxu0 %vm315_vm3, %v1832_v34 }
  0x7b   : > { %1982 = vmatmul.mubr.msk.bf16.gmra.mrb[4].mxu0 %vm315_vm3, %v1833_v55 }
  0x7c   : > { %1942 = vmatmul.mubr.msk.bf16.vlgmr.msra.gmra.mrb[4].mxu1 %vm315_vm3, %v1775_v48 }
 0x13b   : > { %v1929_v28 = vpop.f32.mrb[0].mxu1 }
 0x13c   : > { %v721_v51 = vpop.f32.mrb[1].mxu1 }
 0x13d   : > { %v1930_v56 = vpop.f32.mrb[2].mxu1 }
 0x13e   : > { %v724_v12 = vpop.f32.mrb[3].mxu1 }
 0x146   : > { %v1979_v31 = vpop.f32.mrb[0].mxu0 }
 0x147   : > { %v1987_v61 = vadd.f32 %v1979_v31, %v1929_v28  ;;  %v1511_v14 = vpop.f32.mrb[1].mxu0 }
 0x148   : > { %v1988_v20 = vadd.f32 %v1511_v14, %v721_v51  ;;  %v1980_v54 = vpop.f32.mrb[2].mxu0 }
 0x149   : > { %v1557_v6 = vadd.f32 %v1987_v61, %v1838_v37  ;;  %v1989_v19 = vadd.f32 %v1980_v54, %v1930_v56  ;;  %v1514_v7 = vpop.f32.mrb[3].mxu0 }
 0x14a   : > { %v1555_v4 = vadd.f32 %v1988_v20, %v1838_v37  ;;  %v1990_v18 = vadd.f32 %v1514_v7, %v724_v12 }
 0x14b   : > { %v1565_v52 = vmax.f32 %v1557_v6, 0.0  ;;  %v1558_v43 = vadd.f32 %v1989_v19, %v1838_v37 }
 0x14c   : > { %v1563_v23 = vmax.f32 %v1555_v4, 0.0  ;;  %v1556_v53 = vadd.f32 %v1990_v18, %v1838_v37 }
 0x14d   : > { %v1578_v58 = vmul.f32 %v1839_v62, %v1565_v52  ;;  %v1566_v41 = vmax.f32 %v1558_v43, 0.0 }
 0x14e   : > { %v1576_v10 = vmul.f32 %v1839_v62, %v1563_v23  ;;  %v1564_v46 = vmax.f32 %v1556_v53, 0.0  ;;  %v1983_v42 = vpop.f32.mrb[4].mxu0 }
 0x14f   : > { %v1943_v33 = vpop.f32.mrb[4].mxu1  ;;  %v1591_v29 = vadd.f32 %v1840_v16, %v1578_v58  ;;  %v1579_v59 = vmul.f32 %v1839_v62, %v1566_v41  ;;  %v1527_v40 = vpop.f32.mrb[5].mxu0 }
 0x150   : > { %v1991_v11 = vadd.f32 %v1983_v42, %v1943_v33  ;;  %v935_v26 = vpop.f32.mrb[5].mxu1  ;;  %v1589_v49 = vadd.f32 %v1840_v16, %v1576_v10  ;;  %v1577_v47 = vmul.f32 %v1839_v62, %v1564_v46  ;;  %v1984_v57 = vpop.f32.mrb[6].mxu0 }
 0x151   : > { %v1992_v27 = vadd.f32 %v1527_v40, %v935_v26  ;;  %v1944_v44 = vpop.f32.mrb[6].mxu1  ;;  %1599 = vst [vmem:[%s2823_s11 + $0x10] sm:$0xff] %v1591_v29  ;;  %v1592_v22 = vadd.f32 %v1840_v16, %v1579_v59  ;;  %v1530_v3 = vpop.f32.mrb[7].mxu0 }
 0x152   : > { %v1561_v1 = vadd.f32 %v1991_v11, %v1838_v37  ;;  %v1993_v21 = vadd.f32 %v1984_v57, %v1944_v44  ;;  %v938_v45 = vpop.f32.mrb[7].mxu1  ;;  %1597 = vst [vmem:[%s2823_s11] sm:$0xff] %v1589_v49  ;;  %v1590_v17 = vadd.f32 %v1840_v16, %v1577_v47 }
 0x153   : > { %v1559_v50 = vadd.f32 %v1992_v27, %v1838_v37  ;;  %v1994_v35 = vadd.f32 %v1530_v3, %v938_v45  ;;  %1600 = vst [vmem:[%s2823_s11 + $0x18] sm:$0xff] %v1592_v22 }
 0x154   : > { %v1569_v24 = vmax.f32 %v1561_v1, 0.0  ;;  %v1562_v39 = vadd.f32 %v1993_v21, %v1838_v37  ;;  %1598 = vst [vmem:[%s2823_s11 + $0x8] sm:$0xff] %v1590_v17 }
 0x155   : > { %v1567_v30 = vmax.f32 %v1559_v50, 0.0  ;;  %v1560_v9 = vadd.f32 %v1994_v35, %v1838_v37 }
 0x156   : > { %v1582_v32 = vmul.f32 %v1839_v62, %v1569_v24  ;;  %v1570_v0 = vmax.f32 %v1562_v39, 0.0 }
 0x157   : > { %v1580_v60 = vmul.f32 %v1839_v62, %v1567_v30  ;;  %v1568_v2 = vmax.f32 %v1560_v9, 0.0 }
 0x158   : > { %v1595_v8 = vadd.f32 %v1840_v16, %v1582_v32  ;;  %v1583_v34 = vmul.f32 %v1839_v62, %v1570_v0 }
 0x159   : > { %v1593_v63 = vadd.f32 %v1840_v16, %v1580_v60  ;;  %v1581_v25 = vmul.f32 %v1839_v62, %v1568_v2 }
 0x15a   : > { %1603 = vst [vmem:[%s2823_s11 + $0x30] sm:$0xff] %v1595_v8  ;;  %v1596_v36 = vadd.f32 %v1840_v16, %v1583_v34 }
 0x15b   : > { %1601 = vst [vmem:[%s2823_s11 + $0x20] sm:$0xff] %v1593_v63  ;;  %v1594_v13 = vadd.f32 %v1840_v16, %v1581_v25 }
 0x15c   : > { %1604 = vst [vmem:[%s2823_s11 + $0x38] sm:$0xff] %v1596_v36 }
 0x15d   : > { %1602 = vst [vmem:[%s2823_s11 + $0x28] sm:$0xff] %v1594_v13 }
 0x15e   : > { %2160 = shalt.err (!%p2157_p6)
}
 0x15f   : > { %s2161_s29 = scalar_lea.hbm %s2834_s27, 1024  ;;  %s2165_s10 = scalar_lea.hbm %s2898_s3, 8192 }
 0x160   : > { %p2162_p7 = scmp.ne.s32.totalorder %s2834_s27, %s2161_s29  ;;  %p2166_p11 = scmp.lt.u32.totalorder %s2834_s27, %s2898_s3 }
 0x161   : > { %p2167_p12 = scmp.lt.u32.totalorder %s2165_s10, %s2161_s29  ;;  %p2169_p0 = scmp.lt.u32.totalorder %s2161_s29, %s2834_s27 }
 0x162   : > { %p2163_p9 = pnand %p2162_p7, %p2317_p3 }
 0x163   : > { %p2168_p13 = por %p2167_p12, %p2166_p11 }
 0x164   : > { %p2164_p10 = pneg %p2163_p9 }
 0x165   : > { %p2170_p1 = por %p2169_p0, %p2168_p13 }
 0x167   : > { %p2171_p2 = pnand %p2170_p1, %p2164_p10 }
 0x169   : > { %2174 = shalt.err (!%p2171_p2)
}
 0x16a   : > { %s2244_s16 = smov 128   ;;  %s2245_s21 = smov 8  }
 0x16b   : > { %2062 = dma.vmem_to_hbm [thread:$0]  (%p2317_p3), %s2836_s20, 1024, %s2834_s27, %s2843_s28, %s2244_s16, %s2244_s16, %s2245_s21  }
 0x16c PF: > { %p2068_p4 = scmp.ge.s32.totalorder %s2241_s19, 2  ;;  %s1637_s24 = sand.u32 1, %s2213_s12  }
 0x16d   : > { %s1638_s4 = scalar_lea.sflag [#allocation3], %s1637_s24 }
 0x16e   : > { %p2065_p5 = pnand %p2068_p4, %p2326_p8 }
 0x170   : > { %2208 = dma.done.wait (!%p2065_p5), %s1638_s4, 1024  }
 0x171   : > { %2210 = vsyncadd (!%p2065_p5), %s1638_s4, 4294966272  ;;  %s16_s19 = sadd.s32 1, %s2241_s19   ;;  %s2905_s12 = smov %s2217_s13 }
 0x172   : > { %p13_p6 = scmp.ge.s32.totalorder %s16_s19, 10   ;;  %s2906_s13 = smov %s2221_s14 }
 0x173   : > { %s2907_s14 = smov %s2335_s30  ;;  %s2908_s15 = smov %s2233_s17 }
 0x174   : > { %s2909_s16 = smov %s2237_s18  ;;  %s2910_s17 = smov %s2913_s22 }
 0x175   : > { %s2911_s18 = smov %s2917_s23  ;;  %15 = sbr.rel (!%p13_p6) target bundleno = 5 (0x5), region = 78 }
 0x17c   :  { %1643 = vsyncpa [#allocation3], 1 }
 0x17d   :  { %1645 = vsyncpa [#allocation3 + $0x1], 1 }

</bundles_post_ra>
